<compile_context>
chip_gen: v6e
topology: v6e:2x2x1
jax: 0.10.0
libtpu: 0.0.40
codegen_flags: <defaults>
</compile_context>

<pallas_src>
import math

import jax
import jax.numpy as jnp
from jax.experimental import pallas as pl
from jax.experimental.pallas import tpu as pltpu

# Folded constants: inner = x * (C1 + C2 * x^2) == C1 * (x + 0.044715 * x^3),
# saving one VPU multiply per element. tanh stays on the EUP slot (kept over a
# sigmoid rewrite since sigmoid may expand to exp + reciprocal).
_C1 = math.sqrt(2.0 / math.pi)
_C2 = _C1 * 0.044715

_LANE = 1024                 # slab width for the general (flatten+pad) path
_BLOCK_BYTES = 4 << 20       # ~4 MiB per block; rows scale with dtype width
_VMEM_LIMIT = 32 << 20       # in+out double buffers = 16 MiB; > v5e's 16 MiB default


def _gelu_kernel(x_ref, o_ref):
    x = x_ref[...]
    c1 = jnp.asarray(_C1, x.dtype)
    c2 = jnp.asarray(_C2, x.dtype)
    half = jnp.asarray(0.5, x.dtype)
    one = jnp.asarray(1.0, x.dtype)
    inner = x * (c1 + c2 * x * x)                      # VPU
    o_ref[...] = half * x * (one + jnp.tanh(inner))    # tanh -> EUP slot


def _pick_tile_r(rows, lane, itemsize):
    """Row tile targeting ~_BLOCK_BYTES per block; sublane/dtype aware."""
    sub = max(1, 32 // itemsize)        # 8 rows (f32), 16 (bf16), 32 (int8)
    if rows <= sub:
        return rows                     # single full-extent block; always legal
    budget = max(sub, (_BLOCK_BYTES // (lane * itemsize)) // sub * sub)
    tile_r = min(budget, rows // sub * sub)
    # For inputs big enough to matter, keep >=2 grid steps so a megacore
    # ("parallel") grid can split across both v7x TensorCores.
    if rows * lane * itemsize > (2 << 20):
        half = -(-((rows + 1) // 2) // sub) * sub
        tile_r = min(tile_r, half)
    return max(sub, tile_r)


def gelu(x):
    """Tanh-approximation GELU, elementwise, via a row-tiled Pallas kernel."""
    orig_shape = x.shape
    n = math.prod(orig_shape) if orig_shape else 1
    if n == 0:
        return x

    itemsize = jnp.dtype(x.dtype).itemsize
    last = orig_shape[-1] if orig_shape else 1

    if orig_shape and last % 128 == 0:
        # Fast path: trailing dim already lane-dense -> no pad / slice copies.
        lane = last
        x2d = x.reshape(-1, lane)
        pad = 0
    else:
        # General path: flatten; pad only to a multiple of _LANE.
        lane = _LANE
        flat = x.reshape(-1)
        pad = (-n) % lane
        if pad:
            flat = jnp.pad(flat, (0, pad))   # zeros; sliced off after the kernel
        x2d = flat.reshape(-1, lane)

    rows = x2d.shape[0]
    tile_r = _pick_tile_r(rows, lane, itemsize)
    # Partial final block (rows % tile_r != 0) is handled by masked stores;
    # garbage reads there are fine since the kernel has no reductions.
    grid = (pl.cdiv(rows, tile_r),)

    out2d = pl.pallas_call(
        _gelu_kernel,
        out_shape=jax.ShapeDtypeStruct((rows, lane), x.dtype),
        grid_spec=pltpu.PrefetchScalarGridSpec(
            num_scalar_prefetch=0,
            grid=grid,
            in_specs=[pl.BlockSpec((tile_r, lane), lambda i: (i, 0))],
            out_specs=pl.BlockSpec((tile_r, lane), lambda i: (i, 0)),
        ),
        compiler_params=pltpu.CompilerParams(
            # Independent tiles: shard across v7x's 2 TCs; neutral on v5e/v6e.
            dimension_semantics=("parallel",),
            vmem_limit_bytes=_VMEM_LIMIT,
        ),
    )(x2d)

    if pad:
        return out2d.reshape(-1)[:n].reshape(orig_shape)
    return out2d.reshape(orig_shape)


def _gelu_ref(x):
    # Exact tanh-GELU formula from the PyTorch module.
    return 0.5 * x * (1.0 + jnp.tanh(jnp.sqrt(2.0 / jnp.pi) * (x + 0.044715 * x**3)))


if __name__ == "__main__":
    key = jax.random.PRNGKey(0)

    # batch=2, seq=8, hidden=32 (elementwise op; general path with padding).
    x = jax.random.normal(key, (2, 8, 32), dtype=jnp.float32)
    out = gelu(x)
    jax.block_until_ready(out)
    assert out.shape == x.shape and out.dtype == x.dtype
    assert jnp.allclose(out, _gelu_ref(x), atol=1e-6, rtol=1e-6)

    # Non-multiple-of-1024 total size: exercises minimal-pad general path.
    y = jax.random.normal(jax.random.PRNGKey(0), (4, 9, 200), dtype=jnp.float32)
    out_y = gelu(y)
    jax.block_until_ready(out_y)
    assert out_y.shape == y.shape and out_y.dtype == y.dtype
    assert jnp.allclose(out_y, _gelu_ref(y), atol=1e-6, rtol=1e-6)

    # Trailing dim multiple of 128: fast path (no pad), partial final row block.
    z = jax.random.normal(jax.random.PRNGKey(0), (2, 6, 256), dtype=jnp.float32)
    out_z = gelu(z)
    jax.block_until_ready(out_z)
    assert out_z.shape == z.shape and out_z.dtype == z.dtype
    assert jnp.allclose(out_z, _gelu_ref(z), atol=1e-6, rtol=1e-6)

    # bf16 activations: dtype-aware tiling path.
    w = jax.random.normal(jax.random.PRNGKey(0), (2, 8, 128), dtype=jnp.bfloat16)
    out_w = gelu(w)
    jax.block_until_ready(out_w)
    assert out_w.shape == w.shape and out_w.dtype == w.dtype
    assert jnp.allclose(out_w.astype(jnp.float32),
                        _gelu_ref(w).astype(jnp.float32), atol=2e-2, rtol=2e-2)

    print("KERNEL_OK")
</pallas_src>

<mosaic_0001>
module attributes {stable_mosaic.version = 11 : i64} {
  func.func @_gelu_kernel(%arg0: i32, %arg1: memref<1x1024xf32, #tpu.memory_space<vmem>>, %arg2: memref<1x1024xf32, #tpu.memory_space<vmem>>) attributes {dimension_semantics = [#tpu.dimension_semantics<parallel>], iteration_bounds = array<i64: 1>, scalar_prefetch = 0 : i64, scratch_operands = 0 : i64, tpu.core_type = #tpu.core_type<tc>, window_params = [{transform_indices = @transform_0, window_bounds = array<i64: 1, 1024>}, {transform_indices = @transform_1, window_bounds = array<i64: 1, 1024>}]} {
    %c0 = arith.constant 0 : index
    %c0_0 = arith.constant 0 : index
    %0 = vector.load %arg1[%c0, %c0_0] : memref<1x1024xf32, #tpu.memory_space<vmem>>, vector<1x1024xf32>
    %cst = arith.constant 0.0356774069 : f32
    %1 = vector.broadcast %cst : f32 to vector<1x1024xf32>
    %2 = arith.mulf %1, %0 : vector<1x1024xf32>
    %3 = arith.mulf %2, %0 : vector<1x1024xf32>
    %cst_1 = arith.constant 0.797884583 : f32
    %4 = vector.broadcast %cst_1 : f32 to vector<1x1024xf32>
    %5 = arith.addf %4, %3 : vector<1x1024xf32>
    %6 = arith.mulf %0, %5 : vector<1x1024xf32>
    %cst_2 = arith.constant 5.000000e-01 : f32
    %7 = vector.broadcast %cst_2 : f32 to vector<1x1024xf32>
    %8 = arith.mulf %7, %0 : vector<1x1024xf32>
    %9 = math.tanh %6 : vector<1x1024xf32>
    %cst_3 = arith.constant 1.000000e+00 : f32
    %10 = vector.broadcast %cst_3 : f32 to vector<1x1024xf32>
    %11 = arith.addf %10, %9 : vector<1x1024xf32>
    %12 = arith.mulf %8, %11 : vector<1x1024xf32>
    %c0_4 = arith.constant 0 : index
    %c0_5 = arith.constant 0 : index
    %13 = vector.load %arg2[%c0_4, %c0_5] : memref<1x1024xf32, #tpu.memory_space<vmem>>, vector<1x1024xf32>
    tpu.vector_store %arg2[%c0_4, %c0_5], %12 {strides = array<i32>} : memref<1x1024xf32, #tpu.memory_space<vmem>>, vector<1x1024xf32>,
    return
  }
  func.func @transform_0(%arg0: i32) -> (i32, i32) {
    %c0_i32 = arith.constant 0 : i32
    %c0_i32_0 = arith.constant 0 : i32
    return %arg0, %c0_i32 : i32, i32
  }
  func.func @transform_1(%arg0: i32) -> (i32, i32) {
    %c0_i32 = arith.constant 0 : i32
    %c0_i32_0 = arith.constant 0 : i32
    return %arg0, %c0_i32 : i32, i32
  }
}

</mosaic_0001>

<bundles_post_ra>
// kernel: tpu_custom_call.1
= control target key start
LH: loop header
LB: loop body
LE: loop exit
PB: predicated region body
PF: predicated region fallthrough
CT: control target
= control target key end

     0   :  { %6 = vsyncpa [#allocation3], 0  ;;  %s112_s0 = inlined_call_operand.hbm [shape: f32[1,1024], index: 0, kind: input, shape index: {}]   ;;  %s113_s1 = inlined_call_operand.hbm [shape: f32[1,1024], index: 1, kind: output, shape index: {}]  }
   0x1   :  { %7 = vsyncpa [#allocation4], 0  ;;  %s94_s6 = smov [#allocation2]  }
   0x2   :  { %s14_s7 = sshll.u32 %s94_s6, 4  ;;  %s15_s7 = int_to_ptr.vmem [resolvable:$true] %s14_s7 }
   0x3   :  { %s58_s8 = scalar_lea.vmem %s15_s7, 128  ;;  %p63_p1 = scmp.lt.s32.totalorder %s15_s7, %s15_s7 }
   0x4   :  { %p59_p0 = scmp.ne.s32.totalorder %s15_s7, %s58_s8  ;;  %p64_p2 = scmp.lt.s32.totalorder %s58_s8, %s58_s8 }
   0x6   :  { %p65_p3 = por %p64_p2, %p63_p1 }
   0x8   :  { %p66_p4 = pnand %p65_p3, %p59_p0 }
   0xa   :  { %69 = shalt.err (!%p66_p4)
}
   0xb   :  { %17 = dma.hbm_to_vmem [thread:$0]  %s112_s0, 128, %s15_s7, [#allocation3]  }
   0xc   :  { %90 = dma.done.wait [#allocation3], 128  }
   0xd   :  { %91 = vsyncadd [#allocation3], 4294967168  ;;  %v21_v0 = vld [vmem:[#allocation2] sm:$0xff]  ;;  %s95_s11 = smov [#allocation5]  }
   0xe   :  { %v22_v1 = vmul.f32 0.035677407, %v21_v0  ;;  %v26_v5 = vmul.f32 0.5, %v21_v0  ;;  %s37_s12 = sshll.u32 %s95_s11, 4  ;;  %s38_s12 = int_to_ptr.vmem [resolvable:$true] %s37_s12 }
   0xf   :  { %s70_s13 = scalar_lea.vmem %s38_s12, 128  ;;  %p75_p6 = scmp.lt.s32.totalorder %s38_s12, %s38_s12 }
  0x10   :  { %v23_v2 = vmul.f32 %v22_v1, %v21_v0  ;;  %p71_p5 = scmp.ne.s32.totalorder %s38_s12, %s70_s13  ;;  %p76_p7 = scmp.lt.s32.totalorder %s70_s13, %s70_s13 }
  0x12   :  { %v24_v3 = vadd.f32 0.7978846, %v23_v2  ;;  %p77_p8 = por %p76_p7, %p75_p6 }
  0x14   :  { %v25_v4 = vmul.f32 %v24_v3, %v21_v0  ;;  %p78_p9 = pnand %p77_p8, %p71_p5 }
  0x16   :  { %48 = vtanh.f32 %v25_v4 }
  0x23   :  { %v49_v6 = vpop.eup %48 }
  0x24   :  { %v28_v7 = vadd.f32 1.0, %v49_v6 }
  0x26   :  { %v29_v8 = vmul.f32 %v28_v7, %v26_v5 }
  0x28   :  { %30 = vst [vmem:[#allocation5] sm:$0xff] %v29_v8 }
  0x29   :  { %81 = shalt.err (!%p78_p9)
}
  0x2a   :  { %40 = dma.vmem_to_hbm [thread:$0]  %s38_s12, 128, %s113_s1, [#allocation4]  }
  0x2b   :  { %92 = dma.done.wait [#allocation4], 128  }
  0x2c   :  { %93 = vsyncadd [#allocation4], 4294967168 }
  0x2d   :  { %44 = vsyncpa [#allocation3], 1 }
  0x2e   :  { %45 = vsyncpa [#allocation4], 1 }

</bundles_post_ra>
